<compile_context>
chip_gen: v5e
topology: v5e:2x2
jax: 0.10.0
libtpu: 0.0.40
codegen_flags: <defaults>
</compile_context>

<pallas_src>
import functools

import jax
import jax.numpy as jnp
from jax.experimental import pallas as pl
from jax.experimental.pallas import tpu as pltpu


def _beta_policy_kernel(x_ref, w1_ref, wh_ref, b1_ref, bh_ref,
                        alpha_ref, beta_ref):
    """One batch tile: tanh encoder + fused Beta heads (softplus + 1)."""
    act = alpha_ref.shape[-1]

    # Encoder: MXU matmul (bf16 or f32 inputs), f32 accumulation, VPU/EUP tanh.
    h = jnp.tanh(
        jnp.dot(x_ref[...], w1_ref[...], preferred_element_type=jnp.float32)
        + b1_ref[...]
    )

    # Fused decoder heads: one MXU matmul over [Wa | Wb]; keep math in f32.
    z = (jnp.dot(h, wh_ref[...].astype(jnp.float32),
                 preferred_element_type=jnp.float32)
         + bh_ref[...])

    # softplus(z) + 1, numerically stable form.
    sp1 = jnp.maximum(z, 0.0) + jnp.log1p(jnp.exp(-jnp.abs(z))) + 1.0

    alpha_ref[...] = sp1[:, :act]
    beta_ref[...] = sp1[:, act:]


def pack_beta_policy_params(w1, b1, wa, ba, wb, bb, *,
                            compute_dtype=jnp.bfloat16):
    """One-time parameter packing at policy init (hoisted out of the forward)."""
    head_w = jnp.concatenate([wa, wb], axis=1).astype(compute_dtype)   # (H, 2A)
    head_b = jnp.concatenate([ba, bb], axis=1).astype(jnp.float32)     # (1, 2A)
    return (jnp.asarray(w1).astype(compute_dtype),
            jnp.asarray(b1, jnp.float32).reshape(1, -1),
            head_w,
            head_b)


def _round_up(n, m):
    return ((n + m - 1) // m) * m


@functools.partial(jax.jit, static_argnames=("batch_tile",))
def beta_policy_forward(x, params, *, batch_tile=2048):
    """Returns (alpha, beta), each of shape (batch, act_dim), float32."""
    w1, b1, head_w, head_b = params
    bsz, obs = x.shape
    hid = w1.shape[1]
    act = head_w.shape[1] // 2

    # Stream x in the compute dtype (bf16 halves the dominant HBM traffic; in a
    # real pipeline the producer already emits bf16 so this cast fuses away).
    x = x.astype(w1.dtype)

    # Batch tiling: 8-sublane aligned, big enough to amortize per-step pipeline
    # overhead; keep >= 2 grid steps for large batches so the "parallel" axis
    # can be sharded across v7x's two TensorCores.
    tb = max(8, min(batch_tile, _round_up(bsz, 8)))
    if bsz >= 1024 and tb >= bsz:
        tb = _round_up(pl.cdiv(bsz, 2), 8)
    nb = pl.cdiv(bsz, tb)   # partial last block handled by Pallas masking

    itemsize = jnp.dtype(w1.dtype).itemsize
    cost = pl.CostEstimate(
        flops=2 * bsz * obs * hid + 2 * bsz * hid * (2 * act),
        transcendentals=bsz * (hid + 2 * (2 * act)),   # tanh=1, softplus=2
        bytes_accessed=(bsz * obs * itemsize            # x stream
                        + obs * hid * itemsize          # W1
                        + hid * (2 * act) * itemsize    # head W
                        + (hid + 2 * act) * 4           # biases (f32)
                        + 2 * bsz * act * 4),           # alpha, beta outputs
    )

    alpha, beta = pl.pallas_call(
        _beta_policy_kernel,
        out_shape=(jax.ShapeDtypeStruct((bsz, act), jnp.float32),
                   jax.ShapeDtypeStruct((bsz, act), jnp.float32)),
        grid=(nb,),
        in_specs=[
            pl.BlockSpec((tb, obs), lambda i: (i, 0)),       # x tile (pipelined)
            pl.BlockSpec((obs, hid), lambda i: (0, 0)),      # W1 (resident)
            pl.BlockSpec((hid, 2 * act), lambda i: (0, 0)),  # fused head W
            pl.BlockSpec((1, hid), lambda i: (0, 0)),        # b1
            pl.BlockSpec((1, 2 * act), lambda i: (0, 0)),    # fused head bias
        ],
        out_specs=(pl.BlockSpec((tb, act), lambda i: (i, 0)),
                   pl.BlockSpec((tb, act), lambda i: (i, 0))),
        compiler_params=pltpu.CompilerParams(
            dimension_semantics=("parallel",),
        ),
        cost_estimate=cost,
    )(x, w1, head_w, b1, head_b)
    return alpha, beta


def reference_forward(x, w1, b1, wa, ba, wb, bb):
    h = jnp.tanh(x @ w1 + b1)
    alpha = jax.nn.softplus(h @ wa + ba) + 1.0
    beta = jax.nn.softplus(h @ wb + bb) + 1.0
    return alpha, beta


if __name__ == "__main__":
    # Small shapes implied by the policy forward: batch=8, obs_dim=32,
    # hidden=32, action_dim=4.
    B, D, H, A = 8, 32, 32, 4

    key = jax.random.PRNGKey(0)
    k = jax.random.split(key, 7)
    x = jax.random.normal(k[0], (B, D), dtype=jnp.float32)
    w1 = jax.random.normal(k[1], (D, H), dtype=jnp.float32) * 0.1
    b1 = jax.random.normal(k[2], (1, H), dtype=jnp.float32) * 0.01
    wa = jax.random.normal(k[3], (H, A), dtype=jnp.float32) * 0.1
    ba = jax.random.normal(k[4], (1, A), dtype=jnp.float32) * 0.01
    wb = jax.random.normal(k[5], (H, A), dtype=jnp.float32) * 0.1
    bb = jax.random.normal(k[6], (1, A), dtype=jnp.float32) * 0.01

    ra, rb = reference_forward(x, w1, b1, wa, ba, wb, bb)

    # 1) f32 streaming: exact-semantics check vs pure-JAX reference.
    params_f32 = pack_beta_policy_params(w1, b1, wa, ba, wb, bb,
                                         compute_dtype=jnp.float32)
    alpha, beta = beta_policy_forward(x, params_f32)
    jax.block_until_ready((alpha, beta))
    assert alpha.shape == (B, A) and beta.shape == (B, A)
    assert jnp.allclose(alpha, ra, atol=1e-5, rtol=1e-5)
    assert jnp.allclose(beta, rb, atol=1e-5, rtol=1e-5)
    # Beta concentrations are >= 1 (softplus >= 0, then +1).
    assert bool(jnp.all(alpha >= 1.0)) and bool(jnp.all(beta >= 1.0))

    # 2) Partial-last-block path (batch not a multiple of the tile):
    #    verifies the un-padded grid = cdiv(bsz, tile) masking behaves.
    B2 = 20
    x2 = jax.random.normal(jax.random.PRNGKey(1), (B2, D), dtype=jnp.float32)
    a2, b2 = beta_policy_forward(x2, params_f32, batch_tile=8)
    jax.block_until_ready((a2, b2))
    ra2, rb2 = reference_forward(x2, w1, b1, wa, ba, wb, bb)
    assert a2.shape == (B2, A) and b2.shape == (B2, A)
    assert jnp.allclose(a2, ra2, atol=1e-5, rtol=1e-5)
    assert jnp.allclose(b2, rb2, atol=1e-5, rtol=1e-5)

    # 3) Default bf16 streaming (perf config): same forward semantics up to
    #    bf16 input rounding (~2^-8 relative); accumulation stays f32.
    params_bf16 = pack_beta_policy_params(w1, b1, wa, ba, wb, bb)
    a3, b3 = beta_policy_forward(x, params_bf16)
    jax.block_until_ready((a3, b3))
    assert jnp.allclose(a3, ra, atol=5e-2, rtol=5e-2)
    assert jnp.allclose(b3, rb, atol=5e-2, rtol=5e-2)
    assert bool(jnp.all(a3 >= 1.0)) and bool(jnp.all(b3 >= 1.0))

    # TODO(synk): Beta distribution methods (sampling, log_prob, entropy,
    # select_action) from BasePolicy/BaseContinuousPolicy are host-side
    # torch.distributions logic, not part of the forward hot path; not ported.

    print("KERNEL_OK")
</pallas_src>

<mosaic_0001>
module attributes {stable_mosaic.version = 11 : i64} {
  func.func @_beta_policy_kernel(%arg0: i32, %arg1: memref<8x32xf32, #tpu.memory_space<vmem>>, %arg2: memref<32x32xf32, #tpu.memory_space<vmem>>, %arg3: memref<32x8xf32, #tpu.memory_space<vmem>>, %arg4: memref<1x32xf32, #tpu.memory_space<vmem>>, %arg5: memref<1x8xf32, #tpu.memory_space<vmem>>, %arg6: memref<8x4xf32, #tpu.memory_space<vmem>>, %arg7: memref<8x4xf32, #tpu.memory_space<vmem>>) attributes {dimension_semantics = [#tpu.dimension_semantics<parallel>], iteration_bounds = array<i64: 1>, scalar_prefetch = 0 : i64, scratch_operands = 0 : i64, tpu.core_type = #tpu.core_type<tc>, window_params = [{transform_indices = @transform_0, window_bounds = array<i64: 8, 32>}, {pipeline_mode = #tpu.pipeline_mode<synchronous>, transform_indices = @transform_1, window_bounds = array<i64: 32, 32>}, {pipeline_mode = #tpu.pipeline_mode<synchronous>, transform_indices = @transform_2, window_bounds = array<i64: 32, 8>}, {pipeline_mode = #tpu.pipeline_mode<synchronous>, transform_indices = @transform_3, window_bounds = array<i64: 1, 32>}, {pipeline_mode = #tpu.pipeline_mode<synchronous>, transform_indices = @transform_4, window_bounds = array<i64: 1, 8>}, {transform_indices = @transform_5, window_bounds = array<i64: 8, 4>}, {transform_indices = @transform_6, window_bounds = array<i64: 8, 4>}]} {
    %c0 = arith.constant 0 : index
    %c0_0 = arith.constant 0 : index
    %0 = vector.load %arg1[%c0, %c0_0] : memref<8x32xf32, #tpu.memory_space<vmem>>, vector<8x32xf32>
    %c0_1 = arith.constant 0 : index
    %c0_2 = arith.constant 0 : index
    %1 = vector.load %arg2[%c0_1, %c0_2] : memref<32x32xf32, #tpu.memory_space<vmem>>, vector<32x32xf32>
    %cst = arith.constant dense<0.000000e+00> : vector<8x32xf32>
    %2 = tpu.matmul %0, %1, %cst {dimension_numbers = #tpu.dot_dimension_numbers<[1], [0], [0], [1], [0, 0, 1, 1], [], []>} : vector<8x32xf32>, vector<32x32xf32>, vector<8x32xf32> -> vector<8x32xf32>
    %c0_3 = arith.constant 0 : index
    %c0_4 = arith.constant 0 : index
    %3 = vector.load %arg4[%c0_3, %c0_4] : memref<1x32xf32, #tpu.memory_space<vmem>>, vector<1x32xf32>
    %4 = vector.broadcast %3 : vector<1x32xf32> to vector<8x32xf32>
    %5 = arith.addf %2, %4 : vector<8x32xf32>
    %6 = math.tanh %5 : vector<8x32xf32>
    %c0_5 = arith.constant 0 : index
    %c0_6 = arith.constant 0 : index
    %7 = vector.load %arg3[%c0_5, %c0_6] : memref<32x8xf32, #tpu.memory_space<vmem>>, vector<32x8xf32>
    %cst_7 = arith.constant dense<0.000000e+00> : vector<8x8xf32>
    %8 = tpu.matmul %6, %7, %cst_7 {dimension_numbers = #tpu.dot_dimension_numbers<[1], [0], [0], [1], [0, 0, 1, 1], [], []>} : vector<8x32xf32>, vector<32x8xf32>, vector<8x8xf32> -> vector<8x8xf32>
    %c0_8 = arith.constant 0 : index
    %c0_9 = arith.constant 0 : index
    %9 = vector.load %arg5[%c0_8, %c0_9] : memref<1x8xf32, #tpu.memory_space<vmem>>, vector<1x8xf32>
    %10 = vector.broadcast %9 : vector<1x8xf32> to vector<8x8xf32>
    %11 = arith.addf %8, %10 : vector<8x8xf32>
    %cst_10 = arith.constant 0.000000e+00 : f32
    %12 = vector.broadcast %cst_10 : f32 to vector<8x8xf32>
    %13 = arith.maximumf %11, %12 : vector<8x8xf32>
    %14 = math.absf %11 : vector<8x8xf32>
    %cst_11 = arith.constant 0.000000e+00 : f32
    %15 = vector.broadcast %cst_11 : f32 to vector<8x8xf32>
    %16 = arith.subf %15, %14 : vector<8x8xf32>
    %17 = math.exp %16 : vector<8x8xf32>
    %18 = math.log1p %17 : vector<8x8xf32>
    %19 = arith.addf %13, %18 : vector<8x8xf32>
    %cst_12 = arith.constant 1.000000e+00 : f32
    %20 = vector.broadcast %cst_12 : f32 to vector<8x8xf32>
    %21 = arith.addf %19, %20 : vector<8x8xf32>
    %22 = vector.extract_strided_slice %21 {offsets = [0, 0], sizes = [8, 4], strides = [1, 1]} : vector<8x8xf32> to vector<8x4xf32>
    %c0_13 = arith.constant 0 : index
    %c0_14 = arith.constant 0 : index
    %23 = vector.load %arg6[%c0_13, %c0_14] : memref<8x4xf32, #tpu.memory_space<vmem>>, vector<8x4xf32>
    tpu.vector_store %arg6[%c0_13, %c0_14], %22 {strides = array<i32>} : memref<8x4xf32, #tpu.memory_space<vmem>>, vector<8x4xf32>,
    %24 = vector.extract_strided_slice %21 {offsets = [0, 4], sizes = [8, 4], strides = [1, 1]} : vector<8x8xf32> to vector<8x4xf32>
    %c0_15 = arith.constant 0 : index
    %c0_16 = arith.constant 0 : index
    %25 = vector.load %arg7[%c0_15, %c0_16] : memref<8x4xf32, #tpu.memory_space<vmem>>, vector<8x4xf32>
    tpu.vector_store %arg7[%c0_15, %c0_16], %24 {strides = array<i32>} : memref<8x4xf32, #tpu.memory_space<vmem>>, vector<8x4xf32>,
    return
  }
  func.func @transform_0(%arg0: i32) -> (i32, i32) {
    %c0_i32 = arith.constant 0 : i32
    %c0_i32_0 = arith.constant 0 : i32
    return %arg0, %c0_i32 : i32, i32
  }
  func.func @transform_1(%arg0: i32) -> (i32, i32) {
    %c0_i32 = arith.constant 0 : i32
    %c0_i32_0 = arith.constant 0 : i32
    %c0_i32_1 = arith.constant 0 : i32
    return %c0_i32, %c0_i32_0 : i32, i32
  }
  func.func @transform_2(%arg0: i32) -> (i32, i32) {
    %c0_i32 = arith.constant 0 : i32
    %c0_i32_0 = arith.constant 0 : i32
    %c0_i32_1 = arith.constant 0 : i32
    return %c0_i32, %c0_i32_0 : i32, i32
  }
  func.func @transform_3(%arg0: i32) -> (i32, i32) {
    %c0_i32 = arith.constant 0 : i32
    %c0_i32_0 = arith.constant 0 : i32
    %c0_i32_1 = arith.constant 0 : i32
    return %c0_i32, %c0_i32_0 : i32, i32
  }
  func.func @transform_4(%arg0: i32) -> (i32, i32) {
    %c0_i32 = arith.constant 0 : i32
    %c0_i32_0 = arith.constant 0 : i32
    %c0_i32_1 = arith.constant 0 : i32
    return %c0_i32, %c0_i32_0 : i32, i32
  }
  func.func @transform_5(%arg0: i32) -> (i32, i32) {
    %c0_i32 = arith.constant 0 : i32
    %c0_i32_0 = arith.constant 0 : i32
    return %arg0, %c0_i32 : i32, i32
  }
  func.func @transform_6(%arg0: i32) -> (i32, i32) {
    %c0_i32 = arith.constant 0 : i32
    %c0_i32_0 = arith.constant 0 : i32
    return %arg0, %c0_i32 : i32, i32
  }
}

</mosaic_0001>

<bundles_post_ra>
// kernel: beta_policy_forward.1
= control target key start
LH: loop header
LB: loop body
LE: loop exit
PB: predicated region body
PF: predicated region fallthrough
CT: control target
= control target key end

     0   :  { %vm31_vm0 = vcmask 261120   ;;  %vm103_vm2 = vcmask 31744   ;;  %s206_s1 = inlined_call_operand.vmem [shape: f32[32,32], index: 1, kind: input, shape index: {}]   ;;  %s207_s3 = inlined_call_operand.vmem [shape: f32[1,32], index: 3, kind: input, shape index: {}]   ;;  %s208_s0 = inlined_call_operand.vmem [shape: f32[8,32], index: 0, kind: input, shape index: {}]   ;;  %s209_s4 = inlined_call_operand.vmem [shape: f32[1,8], index: 4, kind: input, shape index: {}]   ;;  %s210_s2 = inlined_call_operand.vmem [shape: f32[32,8], index: 2, kind: input, shape index: {}]   ;;  %s211_s5 = inlined_call_operand.vmem [shape: f32[8,4], index: 5, kind: output, shape index: {0}]   ;;  %s212_s6 = inlined_call_operand.vmem [shape: f32[8,4], index: 6, kind: output, shape index: {1}]  }
   0x1   :  { %v26_v0 = vld [vmem:[%s206_s1 + $0x18] sm:$0xff]  ;;  %v25_v1 = vld [vmem:[%s206_s1 + $0x10] sm:$0xff]  ;;  %v24_v2 = vld [vmem:[%s206_s1 + $0x8] sm:$0xff] }
   0x2   :  { %47 = vmatpush.msra.mxu0 %v26_v0  ;;  %v23_v3 = vld [vmem:[%s206_s1] sm:$0xff]  ;;  %v59_v5 = vld [vmem:[%s210_s2 + $0x18] sm:$0xff]  ;;  %v58_v6 = vld [vmem:[%s210_s2 + $0x10] sm:$0xff] }
   0x3   :  { %v22_v4 = vld [vmem:[%s208_s0] sm:$0xff]  ;;  %79 = vmatpush.msra.mxu1 %v59_v5  ;;  %v57_v7 = vld [vmem:[%s210_s2 + $0x8] sm:$0xff] }
   0x4   :  { %48 = vmatpush.msra.mxu0 %v25_v1  ;;  %v56_v8 = vld [vmem:[%s210_s2] sm:$0xff]  ;;  %s129_s2 = smov 124  }
   0x5   :  { %80 = vmatpush.msra.mxu1 %v58_v6  ;;  %v121_v9 = vld [vmem:[%s207_s3] ss:$0 sm:$0xff] }
   0x6   :  { %49 = vmatpush.msra.mxu0 %v24_v2  ;;  %v122_v13 = vld [vmem:[%s209_s4] ss:$0 sm:$0xff] }
   0x7   :  { %81 = vmatpush.msra.mxu1 %v57_v7 }
   0x8   :  { %50 = vmatpush.msra.mxu0 %v23_v3 }
   0x9   :  { %118 = vmatmul.msk.f32.vlgmr.msra.gmra.mxu0 %vm31_vm0, %v22_v4  ;;  %82 = vmatpush.msra.mxu1 %v56_v8 }
  0x86   :  { %v52_v10 = vpop.f32.mrf.mxu0 }
  0x87   :  { %v53_v11 = vadd.f32 %v121_v9, %v52_v10 }
  0x89   :  { %123 = vtanh.f32 %v53_v11 }
  0x8f   :  { %v124_v12 = vpop.eup %123 }
  0x90   :  { %119 = vmatmul.msk.f32.vlgmr.msra.gmra.mxu1 %vm31_vm0, %v124_v12 }
 0x10d   :  { %v84_v14 = vpop.f32.mrf.mxu1 }
 0x10e   :  { %v85_v15 = vadd.f32 %v122_v13, %v84_v14 }
 0x110   :  { %v88_v16 = vand.u32 2147483647, %v85_v15  ;;  %v87_v27 = vmax.f32 %v85_v15, 0.0 }
 0x112   :  { %v89_v17 = vsub.f32 0.0, %v88_v16 }
 0x114   :  { %v90_v18 = vmul.f32 1.442695, %v89_v17 }
 0x116   :  { %125 = vpow2.f32 %v90_v18 }
 0x11c   :  { %v126_v19 = vpop.eup %125 }
 0x11d   :  { %v92_v20 = vadd.f32 1.0, %v126_v19  ;;  %v95_v21 = vmul.f32 -0.5, %v126_v19  ;;  %v98_v23 = vand.u32 2147483647, %v126_v19 }
 0x11f   :  { %127 = vlog2.f32 %v92_v20  ;;  %v96_v22 = vadd.f32 1.0, %v95_v21  ;;  %vm99_vm1 = vcmp.lt.f32.partialorder %v98_v23, 0.0004427343 }
 0x121   :  { %v97_v26 = vmul.f32 %v126_v19, %v96_v22 }
 0x125   :  { %v128_v24 = vpop.eup %127 }
 0x126   :  { %v94_v25 = vmul.f32 0.6931472, %v128_v24 }
 0x128   :  { %v100_v28 = vsel %vm99_vm1, %v97_v26, %v94_v25 }
 0x129   :  { %v101_v29 = vadd.f32 %v100_v28, %v87_v27 }
 0x12b   :  { %v102_v30 = vadd.f32 1.0, %v101_v29 }
 0x12d   :  { %106 = vrot.lane.b32.xlu0 %v102_v30, %s129_s2  ;;  %104 = vst.msk [vmem:[%s211_s5] sm:$0xff] %vm103_vm2, %v102_v30 }
 0x19f   :  { %v107_v31 = vpop.permute.xlu0 %106 }
 0x1a0   :  { %109 = vst.msk [vmem:[%s212_s6] sm:$0xff] %vm103_vm2, %v107_v31 }

</bundles_post_ra>
